<compile_context>
chip_gen: v7x
topology: tpu7x:2x2x1
jax: 0.10.0
libtpu: 0.0.40
codegen_flags: <defaults>
</compile_context>

<pallas_src>
import functools

import jax
import jax.numpy as jnp
from jax import lax
from jax.experimental import pallas as pl
from jax.experimental.pallas import tpu as pltpu


def _round_up(x, m):
    return ((x + m - 1) // m) * m


def _vq_kernel(x_aug_ref, cb_ref, idx_ref, dist_ref, *, k_chunk):
    # x_aug_ref: (C+1, TN)  rows 0..C-1 = x^T, last row = 1
    # cb_ref:    (C+1, K)   rows 0..C-1 = -2 * codebook^T, last row = ||codebook_k||^2
    # idx_ref:   (1, TN)    argmin indices (int32), lane-dense row
    # dist_ref:  (1, TN)    min over k of (-2*x.c + ||c||^2); ||x||^2 + clamp in wrapper
    xa = x_aug_ref[...]                                     # (C+1, TN), MXU dtype
    tn = xa.shape[1]
    k_total = cb_ref.shape[1]
    num_chunks = k_total // k_chunk

    # Loop-invariant local row-index iota (int32), hoisted out of the chunk loop.
    row_local = lax.broadcasted_iota(jnp.int32, (k_chunk, tn), 0)
    sentinel = jnp.int32(k_chunk)                           # > any valid local row index

    def body(c, carry):
        best_d, best_i = carry                              # (1, TN): f32 / int32
        start = pl.multiple_of(c * k_chunk, k_chunk)
        cb_c = cb_ref[:, pl.ds(start, k_chunk)]             # (C+1, k_chunk)
        # MXU: contract over C+1 -> (k_chunk, TN) = -2 * x.c + ||c||^2
        dt = lax.dot_general(cb_c, xa, (((0,), (0,)), ((), ())),
                             preferred_element_type=jnp.float32)
        chunk_min = jnp.min(dt, axis=0, keepdims=True)      # (1, TN)
        # First-index argmin within the chunk via masked index-min (all int32).
        cand = jnp.where(dt == chunk_min, row_local, sentinel)
        chunk_arg = jnp.min(cand, axis=0, keepdims=True)    # (1, TN) local index
        take = chunk_min < best_d                           # strict < keeps earlier chunk on ties
        best_d = jnp.where(take, chunk_min, best_d)
        # Global chunk offset applied only to the (1, TN) winner, not the full tile.
        best_i = jnp.where(take, chunk_arg + c * k_chunk, best_i)
        return best_d, best_i

    init = (jnp.full((1, tn), jnp.inf, jnp.float32),
            jnp.zeros((1, tn), jnp.int32))
    if num_chunks == 1:
        best_d, best_i = body(jnp.int32(0), init)
    else:
        # unroll=2 overlaps the MXU of chunk c+1 with the VALU reduce of chunk c
        # without spilling many live (k_chunk, TN) tiles like a full unroll would.
        best_d, best_i = lax.fori_loop(0, num_chunks, body, init, unroll=2)

    idx_ref[...] = best_i
    dist_ref[...] = best_d


@functools.partial(jax.jit, static_argnames=("tile_n", "k_chunk", "mxu_dtype"))
def vector_quantize_forward(x, codebook, tile_n=512, k_chunk=128,
                            mxu_dtype=jnp.float32):
    """Pallas implementation of VectorQuantize.forward(x, return_dists=True).

    Args:
      x:         (N, C) float array of vectors to quantize.
      codebook:  (K, C) float codebook; K must be a multiple of 128.
      tile_n:    lane tile over N (multiple of 128).  Keep N/tile_n >= 2 and even
                 so the 'parallel' grid axis load-balances v7x's 2 TensorCores.
      k_chunk:   codebook chunk (multiple of 128 dividing K); k_chunk*tile_n of
                 ~32-64K f32 elements keeps the live distance tile near the vreg file.
      mxu_dtype: dtype of the MXU operands.  jnp.bfloat16 halves MXU passes and
                 operand DMA/VMEM (recommended on v6e/v7x) at the cost of exact
                 near-tie argmin parity with an f32 reference.
    Returns:
      (quantized (N, C), idx (N,) int32, min_dists (N,) float32)
    """
    N, C = x.shape
    K, C2 = codebook.shape
    assert C == C2
    assert K % 128 == 0, "pad the codebook to a multiple of 128 entries"
    k_chunk = min(k_chunk, K)
    assert k_chunk % 128 == 0 and K % k_chunk == 0
    assert tile_n % 128 == 0

    xf = x.astype(jnp.float32)
    cbf = codebook.astype(jnp.float32)

    # ||x||^2 is constant over k: added (and clamped) outside the kernel.
    x2 = jnp.sum(xf * xf, axis=1)                                     # (N,)

    # Pad N up to a multiple of tile_n (padded columns are discarded afterwards).
    tile_n = min(tile_n, _round_up(N, 128))
    n_pad = _round_up(N, tile_n)
    x_t = xf.T                                                        # (C, N)
    if n_pad != N:
        x_t = jnp.pad(x_t, ((0, 0), (0, n_pad - N)))

    # Lane-dense, MXU-ready operands; the -2 scaling lives on the (small) codebook.
    x_aug = jnp.concatenate([x_t, jnp.ones((1, n_pad), jnp.float32)],
                            axis=0).astype(mxu_dtype)                 # (C+1, n_pad)
    cb_aug = jnp.concatenate([-2.0 * cbf.T,
                              jnp.sum(cbf * cbf, axis=1)[None, :]],
                             axis=0).astype(mxu_dtype)                # (C+1, K)

    num_tiles = n_pad // tile_n
    kernel = functools.partial(_vq_kernel, k_chunk=k_chunk)
    idx_row, dt_row = pl.pallas_call(
        kernel,
        out_shape=(
            jax.ShapeDtypeStruct((1, n_pad), jnp.int32),
            jax.ShapeDtypeStruct((1, n_pad), jnp.float32),
        ),
        grid_spec=pltpu.PrefetchScalarGridSpec(
            num_scalar_prefetch=0,
            grid=(num_tiles,),
            in_specs=[
                pl.BlockSpec((C + 1, tile_n), lambda i: (0, i)),   # augmented x tile
                # Full augmented codebook stays resident (constant index map).
                # TODO(synk): for very large K (>= 2^16) on v7x (64 MiB VMEM), move K
                # to a second 'arbitrary' grid axis with the running (min, argmin)
                # carried in VMEM scratch instead of keeping K resident.
                pl.BlockSpec((C + 1, K), lambda i: (0, 0)),
            ],
            out_specs=[
                pl.BlockSpec((1, tile_n), lambda i: (0, i)),       # idx row
                pl.BlockSpec((1, tile_n), lambda i: (0, i)),       # partial dist row
            ],
        ),
        compiler_params=pltpu.CompilerParams(
            dimension_semantics=("parallel",)),
    )(x_aug, cb_aug)

    idx = idx_row[0, :N]
    dists = jnp.maximum(dt_row[0, :N] + x2, 0.0)   # deferred ||x||^2 add + clamp
    q = jnp.take(codebook, idx, axis=0)            # codebook[idx] — plain gather
    return q, idx, dists


def init_codebook(key, codebook_size, channels, dtype=jnp.float32):
    # Matches nn.init.kaiming_uniform_ (a=0): bound = sqrt(6 / fan_in), fan_in = channels.
    bound = (6.0 / channels) ** 0.5
    return jax.random.uniform(key, (codebook_size, channels), dtype,
                              minval=-bound, maxval=bound)


def _reference(x, codebook):
    # Pure-JAX reference for correctness checking (squared L2 nearest neighbour).
    d = (jnp.sum(x * x, -1, keepdims=True)
         - 2.0 * x @ codebook.T
         + jnp.sum(codebook * codebook, -1)[None, :])
    d = jnp.maximum(d, 0.0)
    idx = jnp.argmin(d, axis=-1).astype(jnp.int32)
    return codebook[idx], idx, jnp.min(d, axis=-1)


if __name__ == "__main__":
    # Small, deterministic example: N=512 vectors, channels=8, codebook=256 entries.
    key = jax.random.PRNGKey(0)
    k_cb, k_x = jax.random.split(key)

    channels = 8
    codebook_size = 256   # small stand-in for the default 2**12
    N = 512

    codebook = init_codebook(k_cb, codebook_size, channels)
    x = jax.random.normal(k_x, (N, channels), jnp.float32)

    # num_tiles = 2 (even -> both v7x TCs busy), num_chunks = 2 (exercises the loop).
    q, idx, dists = vector_quantize_forward(x, codebook, tile_n=256, k_chunk=128)
    jax.block_until_ready((q, idx, dists))

    q_ref, idx_ref, d_ref = _reference(x, codebook)
    assert jnp.array_equal(idx, idx_ref)
    assert jnp.allclose(q, q_ref, atol=1e-5)
    assert jnp.allclose(dists, d_ref, atol=1e-4)

    print("KERNEL_OK")
</pallas_src>

<mosaic_0001>
module attributes {stable_mosaic.version = 11 : i64} {
  func.func @_vq_kernel(%arg0: i32, %arg1: memref<9x256xf32, #tpu.memory_space<vmem>>, %arg2: memref<9x256xf32, #tpu.memory_space<vmem>>, %arg3: memref<1x256xi32, #tpu.memory_space<vmem>>, %arg4: memref<1x256xf32, #tpu.memory_space<vmem>>) attributes {dimension_semantics = [#tpu.dimension_semantics<parallel>], iteration_bounds = array<i64: 2>, scalar_prefetch = 0 : i64, scratch_operands = 0 : i64, tpu.core_type = #tpu.core_type<tc>, window_params = [{transform_indices = @transform_0, window_bounds = array<i64: 9, 256>}, {pipeline_mode = #tpu.pipeline_mode<synchronous>, transform_indices = @transform_1, window_bounds = array<i64: 9, 256>}, {transform_indices = @transform_2, window_bounds = array<i64: 1, 256>}, {transform_indices = @transform_3, window_bounds = array<i64: 1, 256>}]} {
    %c0 = arith.constant 0 : index
    %c0_0 = arith.constant 0 : index
    %0 = vector.load %arg1[%c0, %c0_0] : memref<9x256xf32, #tpu.memory_space<vmem>>, vector<9x256xf32>
    %1 = tpu.iota {dimensions = array<i32: 0>} : vector<128x256xi32>
    %cst = arith.constant 0x7F800000 : f32
    %2 = vector.broadcast %cst : f32 to vector<1x256xf32>
    %c0_i32 = arith.constant 0 : i32
    %3 = vector.broadcast %c0_i32 : i32 to vector<1x256xi32>
    %c128_i32 = arith.constant 128 : i32
    %c0_i32_1 = arith.constant 0 : i32
    %c128_i32_2 = arith.constant 128 : i32
    %4 = arith.muli %c0_i32_1, %c128_i32_2 : i32
    %5 = tpu.assume_multiple %4, 128 : i32
    %c0_3 = arith.constant 0 : index
    %6 = arith.index_cast %5 : i32 to index
    %7 = vector.load %arg2[%c0_3, %6] : memref<9x256xf32, #tpu.memory_space<vmem>>, vector<9x128xf32>
    %cst_4 = arith.constant dense<0.000000e+00> : vector<128x256xf32>
    %8 = tpu.matmul %7, %0, %cst_4 {dimension_numbers = #tpu.dot_dimension_numbers<[0], [0], [1], [1], [0, 1, 1, 1], [], []>} : vector<9x128xf32>, vector<9x256xf32>, vector<128x256xf32> -> vector<128x256xf32>
    %cst_5 = arith.constant dense<0x7F800000> : vector<256xf32>
    %9 = vector.multi_reduction <minimumf>, %8, %cst_5 [0] : vector<128x256xf32> to vector<256xf32>
    %10 = vector.shape_cast %9 : vector<256xf32> to vector<1x256xf32>
    %11 = vector.broadcast %10 : vector<1x256xf32> to vector<128x256xf32>
    %12 = arith.cmpf oeq, %8, %11 : vector<128x256xf32>
    %13 = vector.broadcast %c128_i32 : i32 to vector<128x256xi32>
    %14 = arith.select %12, %1, %13 : vector<128x256xi1>, vector<128x256xi32>
    %cst_6 = arith.constant dense<2147483647> : vector<256xi32>
    %15 = vector.multi_reduction <minsi>, %14, %cst_6 [0] : vector<128x256xi32> to vector<256xi32>
    %16 = vector.shape_cast %15 : vector<256xi32> to vector<1x256xi32>
    %17 = arith.cmpf olt, %10, %2 : vector<1x256xf32>
    %18 = arith.select %17, %10, %2 : vector<1x256xi1>, vector<1x256xf32>
    %c128_i32_7 = arith.constant 128 : i32
    %19 = arith.muli %c0_i32_1, %c128_i32_7 : i32
    %20 = vector.broadcast %19 : i32 to vector<1x256xi32>
    %21 = arith.addi %16, %20 : vector<1x256xi32>
    %22 = arith.select %17, %21, %3 : vector<1x256xi1>, vector<1x256xi32>
    %c1_i32 = arith.constant 1 : i32
    %c128_i32_8 = arith.constant 128 : i32
    %23 = arith.muli %c1_i32, %c128_i32_8 : i32
    %24 = tpu.assume_multiple %23, 128 : i32
    %c0_9 = arith.constant 0 : index
    %25 = arith.index_cast %24 : i32 to index
    %26 = vector.load %arg2[%c0_9, %25] : memref<9x256xf32, #tpu.memory_space<vmem>>, vector<9x128xf32>
    %cst_10 = arith.constant dense<0.000000e+00> : vector<128x256xf32>
    %27 = tpu.matmul %26, %0, %cst_10 {dimension_numbers = #tpu.dot_dimension_numbers<[0], [0], [1], [1], [0, 1, 1, 1], [], []>} : vector<9x128xf32>, vector<9x256xf32>, vector<128x256xf32> -> vector<128x256xf32>
    %cst_11 = arith.constant dense<0x7F800000> : vector<256xf32>
    %28 = vector.multi_reduction <minimumf>, %27, %cst_11 [0] : vector<128x256xf32> to vector<256xf32>
    %29 = vector.shape_cast %28 : vector<256xf32> to vector<1x256xf32>
    %30 = vector.broadcast %29 : vector<1x256xf32> to vector<128x256xf32>
    %31 = arith.cmpf oeq, %27, %30 : vector<128x256xf32>
    %32 = vector.broadcast %c128_i32 : i32 to vector<128x256xi32>
    %33 = arith.select %31, %1, %32 : vector<128x256xi1>, vector<128x256xi32>
    %cst_12 = arith.constant dense<2147483647> : vector<256xi32>
    %34 = vector.multi_reduction <minsi>, %33, %cst_12 [0] : vector<128x256xi32> to vector<256xi32>
    %35 = vector.shape_cast %34 : vector<256xi32> to vector<1x256xi32>
    %36 = arith.cmpf olt, %29, %18 : vector<1x256xf32>
    %37 = arith.select %36, %29, %18 : vector<1x256xi1>, vector<1x256xf32>
    %c128_i32_13 = arith.constant 128 : i32
    %38 = arith.muli %c1_i32, %c128_i32_13 : i32
    %39 = vector.broadcast %38 : i32 to vector<1x256xi32>
    %40 = arith.addi %35, %39 : vector<1x256xi32>
    %41 = arith.select %36, %40, %22 : vector<1x256xi1>, vector<1x256xi32>
    %c2_i32 = arith.constant 2 : i32
    %c0_14 = arith.constant 0 : index
    %c0_15 = arith.constant 0 : index
    %42 = vector.load %arg3[%c0_14, %c0_15] : memref<1x256xi32, #tpu.memory_space<vmem>>, vector<1x256xi32>
    tpu.vector_store %arg3[%c0_14, %c0_15], %41 {strides = array<i32>} : memref<1x256xi32, #tpu.memory_space<vmem>>, vector<1x256xi32>,
    %c0_16 = arith.constant 0 : index
    %c0_17 = arith.constant 0 : index
    %43 = vector.load %arg4[%c0_16, %c0_17] : memref<1x256xf32, #tpu.memory_space<vmem>>, vector<1x256xf32>
    tpu.vector_store %arg4[%c0_16, %c0_17], %37 {strides = array<i32>} : memref<1x256xf32, #tpu.memory_space<vmem>>, vector<1x256xf32>,
    return
  }
  func.func @transform_0(%arg0: i32) -> (i32, i32) {
    %c0_i32 = arith.constant 0 : i32
    %c0_i32_0 = arith.constant 0 : i32
    return %c0_i32, %arg0 : i32, i32
  }
  func.func @transform_1(%arg0: i32) -> (i32, i32) {
    %c0_i32 = arith.constant 0 : i32
    %c0_i32_0 = arith.constant 0 : i32
    %c0_i32_1 = arith.constant 0 : i32
    return %c0_i32, %c0_i32_0 : i32, i32
  }
  func.func @transform_2(%arg0: i32) -> (i32, i32) {
    %c0_i32 = arith.constant 0 : i32
    %c0_i32_0 = arith.constant 0 : i32
    return %c0_i32, %arg0 : i32, i32
  }
  func.func @transform_3(%arg0: i32) -> (i32, i32) {
    %c0_i32 = arith.constant 0 : i32
    %c0_i32_0 = arith.constant 0 : i32
    return %c0_i32, %arg0 : i32, i32
  }
}

</mosaic_0001>

<bundles_post_ra>
// kernel: vector_quantize_forward.1
= control target key start
LH: loop header
LB: loop body
LE: loop exit
PB: predicated region body
PF: predicated region fallthrough
CT: control target
= control target key end

     0   :  { %s1368_s12 = smov 0   ;;  %s1370_s13 = smov 0   ;;  %s2220_s0 = inlined_call_operand.vmem [shape: f32[9,512], index: 0, kind: input, shape index: {}]   ;;  %s2221_s1 = inlined_call_operand.vmem [shape: f32[9,256], index: 1, kind: input, shape index: {}]   ;;  %s2222_s2 = inlined_call_operand.vmem [shape: s32[1,512], index: 2, kind: output, shape index: {0}]   ;;  %s2223_s3 = inlined_call_operand.vmem [shape: f32[1,512], index: 3, kind: output, shape index: {1}]  }
   0x1   :  { %s1372_s14 = smov 0  }
   0x2 LB: > { %s1230_s15 = sadd.s32 4294967295, %s1343_s14   ;;  %s1385_s16 = sadd.s32 1, %s1343_s14   ;;  %s1343_s14 = sphi %s1372_s14, %s2366_s14   ;;  %s1339_s13 = sphi %s1370_s13, %s2365_s13   ;;  %s1335_s12 = sphi %s1368_s12, %s2364_s12  }
   0x3   : > { %s18_s17 = ssub.s32 %s1343_s14, %s1385_s16  ;;  %s21_s18 = sadd.s32 1, %s1339_s13 }
   0x4   : > { %p19_p0 = scmp.eq.s32.totalorder %s18_s17, 0  ;;  %p28_p1 = scmp.ne.s32.totalorder %s1339_s13, %s1335_s12 }
   0x5   : > { %p29_p2 = scmp.eq.s32.totalorder %s1343_s14, 0  ;;  %p1233_p4 = scmp.ge.s32.totalorder %s1343_s14, 2 }
   0x6   : > { %s1394_s19 = scalar_select %p19_p0, %s1339_s13, %s21_s18  }
   0x7   : > { %p30_p3 = por %p29_p2, %p28_p1  ;;  %130 = sbr.rel (%p1233_p4) target bundleno = 21 (0x15), region = 20 }
   0xe   : > { %133 = sbr.rel (!%p30_p3) target bundleno = 21 (0x15), region = 24  ;;  %s135_s20 = sand.u32 (%p30_p3), 1, %s1339_s13  }
   0xf   : > { %s1281_s21 = sshll.u32 (%p30_p3), %s1343_s14, 4  ;;  %s1234_s22 = sshll.u32 (%p30_p3), %s135_s20, 5 }
  0x10   : > { %s140_s25 = scalar_lea.vmem (%p30_p3), %s2220_s0, %s1281_s21  ;;  %s137_s26 = scalar_lea.vmem (%p30_p3), [#allocation2], %s1234_s22 }
  0x11   : > { %v153_v0 = vld [vmem:[%s140_s25] sm:$0xff] (%p30_p3)  ;;  %v155_v1 = vld [vmem:[%s140_s25 + $0x8] sm:$0xff] (%p30_p3) }
  0x12   : > { %v157_v2 = vld [vmem:[%s140_s25 + $0x20] sm:$0xff] (%p30_p3)  ;;  %154 = vst [vmem:[%s137_s26] sm:$0xff] (%p30_p3), %v153_v0  ;;  %156 = vst [vmem:[%s137_s26 + $0x8] sm:$0xff] (%p30_p3), %v155_v1  ;;  %v159_v3 = vld [vmem:[%s140_s25 + $0x28] sm:$0xff] (%p30_p3) }
  0x13   : > { %158 = vst [vmem:[%s137_s26 + $0x10] sm:$0xff] (%p30_p3), %v157_v2  ;;  %160 = vst [vmem:[%s137_s26 + $0x18] sm:$0xff] (%p30_p3), %v159_v3 }
  0x15 PF: > { %p1237_p5 = scmp.ge.s32.totalorder %s1343_s14, 1  ;;  %p165_p6 = scmp.lt.s32.totalorder %s1343_s14, 3 }
  0x17   : > { %p166_p7 = pnand %p1237_p5, %p165_p6 }
  0x19   : > { %169 = sbr.rel (%p166_p7) target bundleno = 550 (0x226), region = 47 }
  0x20   : > { %v1259_v4 = vld [vmem:[%s2221_s1 + $0x8] sm:$0xff]  ;;  %v230_v5 = vld [vmem:[%s2221_s1] sm:$0xff]  ;;  %s172_s4 = sand.u32 1, %s1335_s12   ;;  %vm313_vm0 = vcmask 1040384   ;;  %v1260_v6 = vld [vmem:[%s2221_s1 + $0x18] sm:$0x1] }
  0x21   : > { %674 = vxpose.xlu0.b32.start [1/2] (short) %v1259_v4, 128  ;;  %232 = vxpose.xlu1.b32.start [1/2] (short) %v230_v5, 128  ;;  %s1238_s5 = sshll.u32 %s172_s4, 5  ;;  %v231_v7 = vld [vmem:[%s2221_s1 + $0x10] sm:$0x1]  ;;  %vm1345_vm1 = vmmov 1   ;;  %v1346_v9 = vmov 0.0   ;;  %vm264_vm3 = vcmask 72704  }
  0x22   : > { %vm1417_vm2 = vmpackc.low %vm313_vm0, %vm1345_vm1  ;;  %384 = vmatprep.mubr.f32.mxu0 %v1346_v9  ;;  %818 = vmatprep.mubr.f32.mxu1 %v1346_v9  ;;  %s174_s10 = scalar_lea.vmem [#allocation2], %s1238_s5  ;;  %s1239_s11 = sshll.u32 %s1230_s15, 1 }
  0x23   : > { %v210_v10 = vld [vmem:[%s174_s10 + $0x8] sm:$0xff]  ;;  %v212_v11 = vld [vmem:[%s174_s10 + $0x18] sm:$0x1]  ;;  %v209_v12 = vld [vmem:[%s174_s10] sm:$0xff]  ;;  %p200_p8 = scmp.lt.s32.totalorder %s1239_s11, 3 }
  0x24   : > { %v1282_v13 = vpack.c.bf16 %v212_v11, %v210_v10  ;;  %v211_v14 = vld [vmem:[%s174_s10 + $0x10] sm:$0x1] }
  0x25   : > { %675 = vxpose.xlu0.b32.end [2/2] (short) %v1260_v6, 128  ;;  %233 = vxpose.xlu1.b32.end [2/2] (short) %v231_v7, 128  ;;  %v1285_v15 = vpack.c.bf16 %v211_v14, %v209_v12  ;;  %s2368_s11 = smov (!%p200_p8, %s1239_s11), 3 }
  0x26   : > { %1284 = vmatprep.subr.msk.bf16.mxu0 %vm1417_vm2, %v1282_v13  ;;  %1290 = vmatprep.subr.msk.bf16.mxu1 %vm1417_vm2, %v1282_v13  ;;  %s207_s15 = scalar_lea.vmem %s2223_s3, %s2368_s11  ;;  %s202_s20 = scalar_lea.vmem %s2222_s2, %s2368_s11 }
  0x27   : > { %1287 = vmatpush1.bf16.msk.msra.mxu0 %vm1417_vm2, %v1285_v15  ;;  %1293 = vmatpush1.bf16.msk.msra.mxu1 %vm1417_vm2, %v1285_v15 }
  0xa1   : > { %v690_v16 = vpop.trf.xlu0  ;;  %v248_v17 = vpop.trf.xlu1 }
  0xa2   : > { %1243 = vmatmul.mubr.msk.f32.vlgmr.msra.gmra.mrb[0].mxu0 %vm264_vm3, %v248_v17  ;;  %1263 = vmatmul.mubr.msk.f32.vlgmr.msra.gmra.mrb[0].mxu1 %vm264_vm3, %v690_v16 }
  0xa3   : > { %390 = vmatprep.mubr.f32.mxu0 %v1346_v9  ;;  %824 = vmatprep.mubr.f32.mxu1 %v1346_v9 }
  0xa5   : > { %v691_v18 = vpop.trf.xlu0  ;;  %v249_v19 = vpop.trf.xlu1 }
  0xa6   : > { %1244 = vmatmul.mubr.msk.f32.gmra.mrb[2].mxu0 %vm264_vm3, %v249_v19  ;;  %1264 = vmatmul.mubr.msk.f32.gmra.mrb[2].mxu1 %vm264_vm3, %v691_v18 }
  0xa7   : > { %396 = vmatprep.mubr.f32.mxu0 %v1346_v9  ;;  %830 = vmatprep.mubr.f32.mxu1 %v1346_v9 }
  0xa9   : > { %v692_v20 = vpop.trf.xlu0  ;;  %v250_v21 = vpop.trf.xlu1 }
  0xaa   : > { %1245 = vmatmul.mubr.msk.f32.gmra.mrb[4].mxu0 %vm264_vm3, %v250_v21  ;;  %1265 = vmatmul.mubr.msk.f32.gmra.mrb[4].mxu1 %vm264_vm3, %v692_v20 }
  0xab   : > { %402 = vmatprep.mubr.f32.mxu0 %v1346_v9  ;;  %836 = vmatprep.mubr.f32.mxu1 %v1346_v9 }
  0xad   : > { %v693_v22 = vpop.trf.xlu0  ;;  %v251_v23 = vpop.trf.xlu1 }
  0xae   : > { %1246 = vmatmul.mubr.msk.f32.gmra.mrb[6].mxu0 %vm264_vm3, %v251_v23  ;;  %1266 = vmatmul.mubr.msk.f32.gmra.mrb[6].mxu1 %vm264_vm3, %v693_v22 }
  0xaf   : > { %408 = vmatprep.mubr.f32.mxu0 %v1346_v9  ;;  %842 = vmatprep.mubr.f32.mxu1 %v1346_v9 }
  0xb1   : > { %v694_v24 = vpop.trf.xlu0  ;;  %v252_v25 = vpop.trf.xlu1 }
  0xb2   : > { %1247 = vmatmul.mubr.msk.f32.gmra.mrb[8].mxu0 %vm264_vm3, %v252_v25  ;;  %1267 = vmatmul.mubr.msk.f32.gmra.mrb[8].mxu1 %vm264_vm3, %v694_v24 }
  0xb3   : > { %414 = vmatprep.mubr.f32.mxu0 %v1346_v9  ;;  %848 = vmatprep.mubr.f32.mxu1 %v1346_v9 }
  0xb5   : > { %v695_v26 = vpop.trf.xlu0  ;;  %v253_v27 = vpop.trf.xlu1 }
  0xb6   : > { %1248 = vmatmul.mubr.msk.f32.gmra.mrb[10].mxu0 %vm264_vm3, %v253_v27  ;;  %1268 = vmatmul.mubr.msk.f32.gmra.mrb[10].mxu1 %vm264_vm3, %v695_v26 }
  0xb7   : > { %420 = vmatprep.mubr.f32.mxu0 %v1346_v9  ;;  %854 = vmatprep.mubr.f32.mxu1 %v1346_v9 }
  0xb9   : > { %v696_v28 = vpop.trf.xlu0  ;;  %v254_v29 = vpop.trf.xlu1 }
  0xba   : > { %1249 = vmatmul.mubr.msk.f32.gmra.mrb[12].mxu0 %vm264_vm3, %v254_v29  ;;  %1269 = vmatmul.mubr.msk.f32.gmra.mrb[12].mxu1 %vm264_vm3, %v696_v28 }
  0xbb   : > { %426 = vmatprep.mubr.f32.mxu0 %v1346_v9  ;;  %860 = vmatprep.mubr.f32.mxu1 %v1346_v9 }
  0xbd   : > { %v697_v30 = vpop.trf.xlu0  ;;  %v255_v31 = vpop.trf.xlu1 }
  0xbe   : > { %1250 = vmatmul.mubr.msk.f32.gmra.mrb[14].mxu0 %vm264_vm3, %v255_v31  ;;  %1270 = vmatmul.mubr.msk.f32.gmra.mrb[14].mxu1 %vm264_vm3, %v697_v30 }
  0xbf   : > { %432 = vmatprep.mubr.f32.mxu0 %v1346_v9  ;;  %866 = vmatprep.mubr.f32.mxu1 %v1346_v9 }
  0xc1   : > { %v698_v32 = vpop.trf.xlu0  ;;  %v256_v33 = vpop.trf.xlu1 }
  0xc2   : > { %1251 = vmatmul.mubr.msk.f32.gmra.mrb[16].mxu0 %vm264_vm3, %v256_v33  ;;  %1271 = vmatmul.mubr.msk.f32.gmra.mrb[16].mxu1 %vm264_vm3, %v698_v32 }
  0xc3   : > { %438 = vmatprep.mubr.f32.mxu0 %v1346_v9  ;;  %872 = vmatprep.mubr.f32.mxu1 %v1346_v9 }
  0xc5   : > { %v699_v34 = vpop.trf.xlu0  ;;  %v257_v35 = vpop.trf.xlu1 }
  0xc6   : > { %1252 = vmatmul.mubr.msk.f32.gmra.mrb[18].mxu0 %vm264_vm3, %v257_v35  ;;  %1272 = vmatmul.mubr.msk.f32.gmra.mrb[18].mxu1 %vm264_vm3, %v699_v34 }
  0xc7   : > { %444 = vmatprep.mubr.f32.mxu0 %v1346_v9  ;;  %878 = vmatprep.mubr.f32.mxu1 %v1346_v9 }
  0xc9   : > { %v700_v36 = vpop.trf.xlu0  ;;  %v258_v37 = vpop.trf.xlu1 }
  0xca   : > { %1253 = vmatmul.mubr.msk.f32.gmra.mrb[20].mxu0 %vm264_vm3, %v258_v37  ;;  %1273 = vmatmul.mubr.msk.f32.gmra.mrb[20].mxu1 %vm264_vm3, %v700_v36 }
  0xcb   : > { %450 = vmatprep.mubr.f32.mxu0 %v1346_v9  ;;  %884 = vmatprep.mubr.f32.mxu1 %v1346_v9 }
  0xcd   : > { %v701_v38 = vpop.trf.xlu0  ;;  %v259_v39 = vpop.trf.xlu1 }
  0xce   : > { %1254 = vmatmul.mubr.msk.f32.gmra.mrb[22].mxu0 %vm264_vm3, %v259_v39  ;;  %1274 = vmatmul.mubr.msk.f32.gmra.mrb[22].mxu1 %vm264_vm3, %v701_v38 }
  0xcf   : > { %456 = vmatprep.mubr.f32.mxu0 %v1346_v9  ;;  %890 = vmatprep.mubr.f32.mxu1 %v1346_v9 }
  0xd1   : > { %v702_v40 = vpop.trf.xlu0  ;;  %v260_v41 = vpop.trf.xlu1 }
  0xd2   : > { %1255 = vmatmul.mubr.msk.f32.gmra.mrb[24].mxu0 %vm264_vm3, %v260_v41  ;;  %1275 = vmatmul.mubr.msk.f32.gmra.mrb[24].mxu1 %vm264_vm3, %v702_v40 }
  0xd3   : > { %462 = vmatprep.mubr.f32.mxu0 %v1346_v9  ;;  %896 = vmatprep.mubr.f32.mxu1 %v1346_v9 }
  0xd5   : > { %v703_v42 = vpop.trf.xlu0  ;;  %v261_v43 = vpop.trf.xlu1 }
  0xd6   : > { %1256 = vmatmul.mubr.msk.f32.gmra.mrb[26].mxu0 %vm264_vm3, %v261_v43  ;;  %1276 = vmatmul.mubr.msk.f32.gmra.mrb[26].mxu1 %vm264_vm3, %v703_v42 }
  0xd7   : > { %468 = vmatprep.mubr.f32.mxu0 %v1346_v9  ;;  %902 = vmatprep.mubr.f32.mxu1 %v1346_v9 }
  0xd9   : > { %v704_v44 = vpop.trf.xlu0  ;;  %v262_v45 = vpop.trf.xlu1 }
  0xda   : > { %1257 = vmatmul.mubr.msk.f32.gmra.mrb[28].mxu0 %vm264_vm3, %v262_v45  ;;  %1277 = vmatmul.mubr.msk.f32.gmra.mrb[28].mxu1 %vm264_vm3, %v704_v44 }
  0xdb   : > { %474 = vmatprep.mubr.f32.mxu0 %v1346_v9  ;;  %908 = vmatprep.mubr.f32.mxu1 %v1346_v9 }
  0xdd   : > { %v705_v46 = vpop.trf.xlu0  ;;  %v263_v47 = vpop.trf.xlu1 }
  0xde   : > { %1258 = vmatmul.mubr.msk.f32.gmra.mrb[30].mxu0 %vm264_vm3, %v263_v47  ;;  %1278 = vmatmul.mubr.msk.f32.gmra.mrb[30].mxu1 %vm264_vm3, %v705_v46 }
 0x175   : > { %v1493_v48 = vpop.f32.mrb[0].mxu0  ;;  %v1495_v49 = vpop.f32.mrb[0].mxu1 }
 0x176   : > { %v1497_v50 = vpop.f32.mrb[1].mxu0  ;;  %v1499_v51 = vpop.f32.mrb[1].mxu1 }
 0x177   : > { %2287 = vst [vmem:[#allocation3_spill] sm:$0xff] %v1499_v51 }
 0x179   : > { %v1501_v52 = vpop.f32.mrb[2].mxu0  ;;  %v1503_v53 = vpop.f32.mrb[2].mxu1 }
 0x17a   : > { %v1505_v54 = vpop.f32.mrb[3].mxu0  ;;  %v1507_v55 = vpop.f32.mrb[3].mxu1 }
 0x17b   : > { %2288 = vst [vmem:[#allocation4_spill] sm:$0xff] %v1507_v55 }
 0x17d   : > { %v1509_v56 = vpop.f32.mrb[4].mxu0  ;;  %v1511_v57 = vpop.f32.mrb[4].mxu1 }
 0x17e   : > { %v481_v58 = vmin.f32 %v1493_v48, %v1509_v56  ;;  %v915_v59 = vmin.f32 %v1495_v49, %v1511_v57  ;;  %v1517_v60 = vpop.f32.mrb[5].mxu0  ;;  %v1519_v61 = vpop.f32.mrb[5].mxu1 }
 0x17f   : > { %2289 = vst [vmem:[#allocation5_spill] sm:$0xff] %v1519_v61  ;;  %v502_v62 = vmin.f32 %v1497_v50, %v1517_v60  ;;  %v936_v63 = vmin.f32 %v1499_v51, %v1519_v61 }
 0x181   : > { %v1525_v0 = vpop.f32.mrb[6].mxu0  ;;  %v1527_v1 = vpop.f32.mrb[6].mxu1 }
 0x182   : > { %v482_v2 = vmin.f32 %v1501_v52, %v1525_v0  ;;  %v916_v3 = vmin.f32 %v1503_v53, %v1527_v1  ;;  %v1533_v4 = vpop.f32.mrb[7].mxu0  ;;  %v1535_v5 = vpop.f32.mrb[7].mxu1 }
 0x183   : > { %2290 = vst [vmem:[#allocation6_spill] sm:$0xff] %v1533_v4  ;;  %2291 = vst [vmem:[#allocation7_spill] sm:$0xff] %v1535_v5  ;;  %v503_v6 = vmin.f32 %v1505_v54, %v1533_v4  ;;  %v937_v7 = vmin.f32 %v1507_v55, %v1535_v5 }
 0x185   : > { %v1541_v8 = vpop.f32.mrb[8].mxu0  ;;  %v1543_v9 = vpop.f32.mrb[8].mxu1 }
 0x186   : > { %v483_v10 = vmin.f32 %v481_v58, %v1541_v8  ;;  %v917_v11 = vmin.f32 %v915_v59, %v1543_v9  ;;  %v1547_v12 = vpop.f32.mrb[9].mxu0  ;;  %v1549_v13 = vpop.f32.mrb[9].mxu1 }
 0x187   : > { %2292 = vst [vmem:[#allocation8_spill] sm:$0xff] %v1547_v12  ;;  %2293 = vst [vmem:[#allocation9_spill] sm:$0xff] %v1549_v13  ;;  %v504_v14 = vmin.f32 %v502_v62, %v1547_v12  ;;  %v938_v15 = vmin.f32 %v936_v63, %v1549_v13  ;;  %v1347_v12 = vmov 1966171168  }
 0x188   : > { %v1742_v4 = vunpack.c.l.s4 %v1347_v12 }
 0x189   : > { %v1553_v16 = vpop.f32.mrb[10].mxu0  ;;  %v1555_v17 = vpop.f32.mrb[10].mxu1 }
 0x18a   : > { %v484_v18 = vmin.f32 %v482_v2, %v1553_v16  ;;  %v918_v19 = vmin.f32 %v916_v3, %v1555_v17  ;;  %v1559_v20 = vpop.f32.mrb[11].mxu0  ;;  %v1561_v21 = vpop.f32.mrb[11].mxu1 }
 0x18b   : > { %2294 = vst [vmem:[#allocation10_spill] sm:$0xff] %v1559_v20  ;;  %2295 = vst [vmem:[#allocation11_spill] sm:$0xff] %v1561_v21  ;;  %v505_v22 = vmin.f32 %v503_v6, %v1559_v20  ;;  %v939_v23 = vmin.f32 %v937_v7, %v1561_v21 }
 0x18d   : > { %v1565_v24 = vpop.f32.mrb[12].mxu0  ;;  %v1567_v25 = vpop.f32.mrb[12].mxu1 }
 0x18e   : > { %v485_v26 = vmin.f32 %v483_v10, %v1565_v24  ;;  %v919_v27 = vmin.f32 %v917_v11, %v1567_v25  ;;  %v1571_v28 = vpop.f32.mrb[13].mxu0  ;;  %v1573_v29 = vpop.f32.mrb[13].mxu1 }
 0x18f   : > { %2296 = vst [vmem:[#allocation12_spill] sm:$0xff] %v1571_v28  ;;  %2297 = vst [vmem:[#allocation13_spill] sm:$0xff] %v1573_v29  ;;  %v506_v30 = vmin.f32 %v504_v14, %v1571_v28  ;;  %v940_v31 = vmin.f32 %v938_v15, %v1573_v29 }
 0x191   : > { %v1577_v32 = vpop.f32.mrb[14].mxu0  ;;  %v1579_v33 = vpop.f32.mrb[14].mxu1 }
 0x192   : > { %v486_v34 = vmin.f32 %v484_v18, %v1577_v32  ;;  %v920_v35 = vmin.f32 %v918_v19, %v1579_v33  ;;  %v1583_v36 = vpop.f32.mrb[15].mxu0  ;;  %v1585_v37 = vpop.f32.mrb[15].mxu1 }
 0x193   : > { %2298 = vst [vmem:[#allocation14_spill] sm:$0xff] %v1583_v36  ;;  %2299 = vst [vmem:[#allocation15_spill] sm:$0xff] %v1585_v37  ;;  %v507_v38 = vmin.f32 %v505_v22, %v1583_v36  ;;  %v941_v39 = vmin.f32 %v939_v23, %v1585_v37 }
 0x195   : > { %v1589_v40 = vpop.f32.mrb[16].mxu0  ;;  %v1591_v41 = vpop.f32.mrb[16].mxu1 }
 0x196   : > { %v487_v42 = vmin.f32 %v485_v26, %v1589_v40  ;;  %v921_v43 = vmin.f32 %v919_v27, %v1591_v41  ;;  %v1595_v44 = vpop.f32.mrb[17].mxu0  ;;  %v1597_v45 = vpop.f32.mrb[17].mxu1 }
 0x197   : > { %2300 = vst [vmem:[#allocation16_spill] sm:$0xff] %v1595_v44  ;;  %2301 = vst [vmem:[#allocation17_spill] sm:$0xff] %v1597_v45  ;;  %v508_v46 = vmin.f32 %v506_v30, %v1595_v44  ;;  %v942_v47 = vmin.f32 %v940_v31, %v1597_v45 }
 0x199   : > { %v1601_v58 = vpop.f32.mrb[18].mxu0  ;;  %v1603_v59 = vpop.f32.mrb[18].mxu1 }
 0x19a   : > { %v488_v62 = vmin.f32 %v486_v34, %v1601_v58  ;;  %v922_v63 = vmin.f32 %v920_v35, %v1603_v59  ;;  %v1607_v2 = vpop.f32.mrb[19].mxu0  ;;  %v1609_v3 = vpop.f32.mrb[19].mxu1 }
 0x19b   : > { %2302 = vst [vmem:[#allocation18_spill] sm:$0xff] %v1607_v2  ;;  %2303 = vst [vmem:[#allocation19_spill] sm:$0xff] %v1609_v3  ;;  %v509_v6 = vmin.f32 %v507_v38, %v1607_v2  ;;  %v943_v7 = vmin.f32 %v941_v39, %v1609_v3 }
 0x19d   : > { %v1613_v10 = vpop.f32.mrb[20].mxu0  ;;  %v1615_v11 = vpop.f32.mrb[20].mxu1 }
 0x19e   : > { %v489_v14 = vmin.f32 %v487_v42, %v1613_v10  ;;  %v923_v15 = vmin.f32 %v921_v43, %v1615_v11  ;;  %v1619_v18 = vpop.f32.mrb[21].mxu0  ;;  %v1621_v19 = vpop.f32.mrb[21].mxu1 }
 0x19f   : > { %2304 = vst [vmem:[#allocation20_spill] sm:$0xff] %v1619_v18  ;;  %2305 = vst [vmem:[#allocation21_spill] sm:$0xff] %v1621_v19  ;;  %v510_v22 = vmin.f32 %v508_v46, %v1619_v18  ;;  %v944_v23 = vmin.f32 %v942_v47, %v1621_v19 }
 0x1a1   : > { %v1625_v26 = vpop.f32.mrb[22].mxu0  ;;  %v1627_v27 = vpop.f32.mrb[22].mxu1 }
 0x1a2   : > { %v490_v30 = vmin.f32 %v488_v62, %v1625_v26  ;;  %v924_v31 = vmin.f32 %v922_v63, %v1627_v27  ;;  %v1631_v34 = vpop.f32.mrb[23].mxu0  ;;  %v1633_v35 = vpop.f32.mrb[23].mxu1 }
 0x1a3   : > { %2306 = vst [vmem:[#allocation22_spill] sm:$0xff] %v1631_v34  ;;  %2307 = vst [vmem:[#allocation23_spill] sm:$0xff] %v1633_v35  ;;  %v511_v38 = vmin.f32 %v509_v6, %v1631_v34  ;;  %v945_v39 = vmin.f32 %v943_v7, %v1633_v35 }
 0x1a5   : > { %v1637_v42 = vpop.f32.mrb[24].mxu0  ;;  %v1639_v43 = vpop.f32.mrb[24].mxu1 }
 0x1a6   : > { %v491_v46 = vmin.f32 %v489_v14, %v1637_v42  ;;  %v925_v47 = vmin.f32 %v923_v15, %v1639_v43  ;;  %v1643_v19 = vpop.f32.mrb[25].mxu0  ;;  %v1645_v62 = vpop.f32.mrb[25].mxu1 }
 0x1a7   : > { %2308 = vst [vmem:[#allocation24_spill] sm:$0xff] %v1643_v19  ;;  %2309 = vst [vmem:[#allocation25_spill] sm:$0xff] %v1645_v62  ;;  %v512_v63 = vmin.f32 %v510_v22, %v1643_v19  ;;  %v946_v3 = vmin.f32 %v944_v23, %v1645_v62 }
 0x1a9   : > { %v1649_v45 = vpop.f32.mrb[26].mxu0  ;;  %v1651_v6 = vpop.f32.mrb[26].mxu1 }
 0x1aa   : > { %v492_v7 = vmin.f32 %v490_v30, %v1649_v45  ;;  %v926_v35 = vmin.f32 %v924_v31, %v1651_v6  ;;  %v1655_v37 = vpop.f32.mrb[27].mxu0  ;;  %v1657_v14 = vpop.f32.mrb[27].mxu1 }
 0x1ab   : > { %2310 = vst [vmem:[#allocation26_spill] sm:$0xff] %v1655_v37  ;;  %2311 = vst [vmem:[#allocation27_spill] sm:$0xff] %v1657_v14  ;;  %v513_v15 = vmin.f32 %v511_v38, %v1655_v37  ;;  %v947_v29 = vmin.f32 %v945_v39, %v1657_v14  ;;  %v2274_v39 = vlaneseq }
 0x1ad   : > { %v1661_v21 = vpop.f32.mrb[28].mxu0  ;;  %v1663_v22 = vpop.f32.mrb[28].mxu1  ;;  %v1686_v19 = vshrl.u32 %v2274_v39, 7 }
 0x1ae   : > { %v493_v23 = vmin.f32 %v491_v46, %v1661_v21  ;;  %v927_v62 = vmin.f32 %v925_v47, %v1663_v22  ;;  %v1667_v13 = vpop.f32.mrb[29].mxu0  ;;  %v1669_v30 = vpop.f32.mrb[29].mxu1 }
 0x1af   : > { %2312 = vst [vmem:[#allocation28_spill] sm:$0xff] %v1667_v13  ;;  %2313 = vst [vmem:[#allocation29_spill] sm:$0xff] %v1669_v30  ;;  %v514_v31 = vmin.f32 %v512_v63, %v1667_v13  ;;  %v948_v5 = vmin.f32 %v946_v3, %v1669_v30  ;;  %v1689_v20 = vadd.s32 8, %v1686_v19  ;;  %v1718_v39 = vadd.s32 80, %v1686_v19 }
 0x1b1   : > { %v1673_v61 = vpop.f32.mrb[30].mxu0  ;;  %v1675_v38 = vpop.f32.mrb[30].mxu1 }
 0x1b2   : > { %v494_v14 = vmin.f32 %v492_v7, %v1673_v61  ;;  %v928_v55 = vmin.f32 %v926_v35, %v1675_v38  ;;  %v1679_v46 = vpop.f32.mrb[31].mxu0  ;;  %v1681_v47 = vpop.f32.mrb[31].mxu1 }
 0x1b3   : > { %2314 = vst [vmem:[#allocation30_spill] sm:$0xff] %v1679_v46  ;;  %2315 = vst [vmem:[#allocation31_spill] sm:$0xff] %v1681_v47  ;;  %v515_v51 = vmin.f32 %v513_v15, %v1679_v46  ;;  %v949_v37 = vmin.f32 %v947_v29, %v1681_v47  ;;  %v1692_v29 = vadd.s32 16, %v1686_v19  ;;  %v1707_v15 = vadd.s32 56, %v1686_v19 }
 0x1b4   : > { %v495_v63 = vmin.f32 %v493_v23, %v494_v14  ;;  %v929_v13 = vmin.f32 %v927_v62, %v928_v55  ;;  %v1710_v23 = vadd.s32 64, %v1686_v19 }
 0x1b5   : > { %v516_v3 = vmin.f32 %v514_v31, %v515_v51  ;;  %v950_v30 = vmin.f32 %v948_v5, %v949_v37  ;;  %v1695_v5 = vadd.s32 24, %v1686_v19  ;;  %v1698_v37 = vadd.s32 32, %v1686_v19 }
 0x1b6   : > { %v496_v34 = vrot.slane %v495_v63, 4  ;;  %v930_v18 = vrot.slane %v929_v13, 4 }
 0x1b7   : > { %v517_v7 = vrot.slane %v516_v3, 4  ;;  %v951_v2 = vrot.slane %v950_v30, 4 }
 0x1b8   : > { %v497_v35 = vmin.f32 %v495_v63, %v496_v34  ;;  %v931_v44 = vmin.f32 %v929_v13, %v930_v18  ;;  %v1701_v13 = vadd.s32 40, %v1686_v19  ;;  %v1715_v63 = vadd.s32 72, %v1686_v19 }
 0x1b9   : > { %v518_v36 = vmin.f32 %v516_v3, %v517_v7  ;;  %v952_v28 = vmin.f32 %v950_v30, %v951_v2  ;;  %v1704_v2 = vadd.s32 48, %v1686_v19 }
 0x1ba   : > { %v498_v55 = vrot.slane %v497_v35, 2  ;;  %v932_v51 = vrot.slane %v931_v44, 2 }
 0x1bb   : > { %v519_v62 = vrot.slane %v518_v36, 2  ;;  %v953_v14 = vrot.slane %v952_v28, 2 }
 0x1bc   : > { %v499_v18 = vmin.f32 %v497_v35, %v498_v55  ;;  %v933_v34 = vmin.f32 %v931_v44, %v932_v51  ;;  %v1721_v35 = vadd.s32 88, %v1686_v19  ;;  %v1724_v44 = vadd.s32 96, %v1686_v19 }
 0x1bd   : > { %v520_v30 = vmin.f32 %v518_v36, %v519_v62  ;;  %v1712_v31 = vmin.f32 %v952_v28, %v953_v14  ;;  %v1727_v51 = vadd.s32 104, %v1686_v19  ;;  %v1730_v28 = vadd.s32 112, %v1686_v19 }
 0x1be   : > { %v500_v3 = vrot.slane %v499_v18, 1  ;;  %v934_v7 = vrot.slane %v933_v34, 1  ;;  %v1733_v36 = vadd.s32 120, %v1686_v19 }
 0x1bf   : > { %v521_v55 = vrot.slane %v520_v30, 1  ;;  %v955_v46 = vrot.slane %v1712_v31, 1 }
 0x1c0   : > { %v1735_v62 = vmin.f32 %v499_v18, %v500_v3  ;;  %v1737_v14 = vmin.f32 %v933_v34, %v934_v7 }
 0x1c1   : > { %v1739_v47 = vmin.f32 %v520_v30, %v521_v55 }
 0x1c2   : > { %vm523_vm4 = vcmp.eq.f32.partialorder %v1493_v48, %v1735_v62  ;;  %vm525_vm5 = vcmp.eq.f32.partialorder %v1501_v52, %v1735_v62  ;;  %vm527_vm6 = vcmp.eq.f32.partialorder %v1509_v56, %v1735_v62  ;;  %vm529_vm7 = vcmp.eq.f32.partialorder %v1525_v0, %v1735_v62 }
 0x1c3   : > { %vm531_vm8 = vcmp.eq.f32.partialorder %v1541_v8, %v1735_v62  ;;  %vm533_vm9 = vcmp.eq.f32.partialorder %v1553_v16, %v1735_v62  ;;  %vm535_vm10 = vcmp.eq.f32.partialorder %v1565_v24, %v1735_v62  ;;  %vm537_vm11 = vcmp.eq.f32.partialorder %v1577_v32, %v1735_v62 }
 0x1c4   : > { %vm539_vm12 = vcmp.eq.f32.partialorder %v1589_v40, %v1735_v62  ;;  %vm541_vm13 = vcmp.eq.f32.partialorder %v1601_v58, %v1735_v62  ;;  %vm543_vm14 = vcmp.eq.f32.partialorder %v1613_v10, %v1735_v62  ;;  %vm545_vm15 = vcmp.eq.f32.partialorder %v1625_v26, %v1735_v62 }
 0x1c5   : > { %vm547_vm0 = vcmp.eq.f32.partialorder %v1637_v42, %v1735_v62  ;;  %vm549_vm1 = vcmp.eq.f32.partialorder %v1649_v45, %v1735_v62  ;;  %vm551_vm2 = vcmp.eq.f32.partialorder %v1661_v21, %v1735_v62  ;;  %vm553_vm3 = vcmp.eq.f32.partialorder %v1673_v61, %v1735_v62 }
 0x1c6   : > { %v555_v12 = vsel %vm523_vm4, %v1686_v19, 128  ;;  %v557_v18 = vsel %vm525_vm5, %v1689_v20, 128  ;;  %v559_v34 = vsel %vm527_vm6, %v1692_v29, 128  ;;  %v561_v30 = vsel %vm529_vm7, %v1695_v5, 128 }
 0x1c7   : > { %v563_v48 = vsel %vm531_vm8, %v1698_v37, 128  ;;  %v565_v52 = vsel %vm533_vm9, %v1701_v13, 128  ;;  %v567_v56 = vsel %vm535_vm10, %v1704_v2, 128  ;;  %v569_v0 = vsel %vm537_vm11, %v1707_v15, 128 }
 0x1c8   : > { %v571_v8 = vsel %vm539_vm12, %v1710_v23, 128  ;;  %v573_v16 = vsel %vm541_vm13, %v1715_v63, 128  ;;  %v575_v24 = vsel %vm543_vm14, %v1718_v39, 128  ;;  %v577_v32 = vsel %vm545_vm15, %v1721_v35, 128 }
 0x1c9   : > { %v579_v40 = vsel %vm547_vm0, %v1724_v44, 128  ;;  %v581_v58 = vsel %vm549_vm1, %v1727_v51, 128  ;;  %v583_v10 = vsel %vm551_vm2, %v1730_v28, 128  ;;  %v585_v26 = vsel %vm553_vm3, %v1733_v36, 128 }
 0x1ca   : > { %vm587_vm4 = vcmp.lt.s32.totalorder %v555_v12, %v559_v34  ;;  %vm589_vm5 = vcmp.lt.s32.totalorder %v557_v18, %v561_v30  ;;  %vm2283_vm6 = vcmp.lt.f32.partialorder %v1735_v62, inf  ;;  %vm957_vm7 = vcmp.eq.f32.partialorder %v1495_v49, %v1737_v14 }
 0x1cb   : > { %v588_v42 = vsel %vm587_vm4, %v555_v12, %v559_v34  ;;  %v590_v45 = vsel %vm589_vm5, %v557_v18, %v561_v30  ;;  %v1846_v3 = vsel %vm2283_vm6, %v1735_v62, inf  ;;  %vm959_vm8 = vcmp.eq.f32.partialorder %v1503_v53, %v1737_v14 }
 0x1cc   : > { %vm591_vm9 = vcmp.lt.s32.totalorder %v588_v42, %v563_v48  ;;  %vm593_vm10 = vcmp.lt.s32.totalorder %v590_v45, %v565_v52  ;;  %vm961_vm11 = vcmp.eq.f32.partialorder %v1511_v57, %v1737_v14  ;;  %vm963_vm12 = vcmp.eq.f32.partialorder %v1527_v1, %v1737_v14 }
 0x1cd   : > { %v592_v61 = vsel %vm591_vm9, %v588_v42, %v563_v48  ;;  %v594_v21 = vsel %vm593_vm10, %v590_v45, %v565_v52  ;;  %vm965_vm13 = vcmp.eq.f32.partialorder %v1543_v9, %v1737_v14  ;;  %vm967_vm14 = vcmp.eq.f32.partialorder %v1555_v17, %v1737_v14  ;;  %v2320_v45 = vld [vmem:[#allocation6_spill] sm:$0xff] }
 0x1ce   : > { %vm595_vm15 = vcmp.lt.s32.totalorder %v592_v61, %v567_v56  ;;  %vm597_vm0 = vcmp.lt.s32.totalorder %v594_v21, %v569_v0  ;;  %vm977_vm10 = vcmp.eq.f32.partialorder %v1615_v11, %v1737_v14  ;;  %vm979_vm6 = vcmp.eq.f32.partialorder %v1627_v27, %v1737_v14 }
 0x1cf   : > { %v596_v7 = vsel %vm595_vm15, %v592_v61, %v567_v56  ;;  %v598_v55 = vsel %vm597_vm0, %v594_v21, %v569_v0  ;;  %vm981_vm15 = vcmp.eq.f32.partialorder %v1639_v43, %v1737_v14  ;;  %vm983_vm0 = vcmp.eq.f32.partialorder %v1651_v6, %v1737_v14 }
 0x1d0   : > { %vm599_vm5 = vcmp.lt.s32.totalorder %v596_v7, %v571_v8  ;;  %vm601_vm9 = vcmp.lt.s32.totalorder %v598_v55, %v573_v16  ;;  %vm985_vm4 = vcmp.eq.f32.partialorder %v1663_v22, %v1737_v14  ;;  %vm987_vm1 = vcmp.eq.f32.partialorder %v1675_v38, %v1737_v14 }
 0x1d1   : > { %v600_v12 = vsel %vm599_vm5, %v596_v7, %v571_v8  ;;  %v602_v18 = vsel %vm601_vm9, %v598_v55, %v573_v16  ;;  %v989_v48 = vsel %vm957_vm7, %v1686_v19, 128  ;;  %v991_v52 = vsel %vm959_vm8, %v1689_v20, 128  ;;  %v2321_v7 = vld [vmem:[#allocation8_spill] sm:$0xff]  ;;  %v2322_v55 = vld [vmem:[#allocation10_spill] sm:$0xff] }
 0x1d2   : > { %vm603_vm3 = vcmp.lt.s32.totalorder %v600_v12, %v575_v24  ;;  %vm605_vm2 = vcmp.lt.s32.totalorder %v602_v18, %v577_v32  ;;  %v993_v56 = vsel %vm961_vm11, %v1692_v29, 128  ;;  %v995_v0 = vsel %vm963_vm12, %v1695_v5, 128 }
 0x1d3   : > { %v604_v34 = vsel %vm603_vm3, %v600_v12, %v575_v24  ;;  %v606_v30 = vsel %vm605_vm2, %v602_v18, %v577_v32  ;;  %v997_v53 = vsel %vm965_vm13, %v1698_v37, 128  ;;  %v999_v16 = vsel %vm967_vm14, %v1701_v13, 128  ;;  %v2323_v12 = vld [vmem:[#allocation12_spill] sm:$0xff] }
 0x1d4   : > { %vm607_vm5 = vcmp.lt.s32.totalorder %v604_v34, %v579_v40  ;;  %vm609_vm9 = vcmp.lt.s32.totalorder %v606_v30, %v581_v58  ;;  %vm2316_vm11 = vcmp.eq.f32.partialorder %v1567_v25, %v1737_v14  ;;  %vm2317_vm12 = vcmp.eq.f32.partialorder %v1579_v33, %v1737_v14 }
 0x1d5   : > { %v608_v8 = vsel %vm607_vm5, %v604_v34, %v579_v40  ;;  %v610_v49 = vsel %vm609_vm9, %v606_v30, %v581_v58  ;;  %v1001_v57 = vsel %vm2316_vm11, %v1704_v2, 128  ;;  %v1003_v1 = vsel %vm2317_vm12, %v1707_v15, 128 }
 0x1d6   : > { %vm611_vm7 = vcmp.lt.s32.totalorder %v608_v8, %v583_v10  ;;  %vm613_vm8 = vcmp.lt.s32.totalorder %v610_v49, %v585_v26  ;;  %vm2318_vm13 = vcmp.eq.f32.partialorder %v1591_v41, %v1737_v14  ;;  %vm2319_vm14 = vcmp.eq.f32.partialorder %v1603_v59, %v1737_v14 }
 0x1d7   : > { %v612_v24 = vsel %vm611_vm7, %v608_v8, %v583_v10  ;;  %v614_v9 = vsel %vm613_vm8, %v610_v49, %v585_v26  ;;  %v1005_v17 = vsel %vm2318_vm13, %v1710_v23, 128  ;;  %v1007_v32 = vsel %vm2319_vm14, %v1715_v63, 128  ;;  %v2326_v49 = vld [vmem:[#allocation18_spill] sm:$0xff] }
 0x1d8   : > { %vm615_vm2 = vcmp.lt.s32.totalorder %v612_v24, %v614_v9  ;;  %v1009_v25 = vsel %vm977_vm10, %v1718_v39, 128  ;;  %v1011_v33 = vsel %vm979_vm6, %v1721_v35, 128  ;;  %v1013_v41 = vsel %vm981_vm15, %v1724_v44, 128 }
 0x1d9   : > { %v616_v40 = vsel %vm615_vm2, %v612_v24, %v614_v9  ;;  %v1015_v59 = vsel %vm983_vm0, %v1727_v51, 128  ;;  %v1017_v11 = vsel %vm985_vm4, %v1730_v28, 128  ;;  %v1019_v27 = vsel %vm987_vm1, %v1733_v36, 128  ;;  %v2329_v9 = vld [vmem:[#allocation24_spill] sm:$0xff] }
 0x1da   : > { %v617_v58 = vrot.slane %v616_v40, 4  ;;  %vm1021_vm6 = vcmp.lt.s32.totalorder %v989_v48, %v993_v56  ;;  %vm1023_vm3 = vcmp.lt.s32.totalorder %v991_v52, %v995_v0  ;;  %vm2284_vm10 = vcmp.lt.f32.partialorder %v1737_v14, %v1846_v3 }
 0x1db   : > { %v1022_v43 = vsel %vm1021_vm6, %v989_v48, %v993_v56  ;;  %v1024_v10 = vsel %vm1023_vm3, %v991_v52, %v995_v0  ;;  %v1949_v6 = vsel %vm2284_vm10, %v1737_v14, %v1846_v3  ;;  %vm524_vm4 = vcmp.eq.f32.partialorder %v1497_v50, %v1739_v47  ;;  %v2324_v48 = vld [vmem:[#allocation14_spill] sm:$0xff]  ;;  %v2325_v56 = vld [vmem:[#allocation16_spill] sm:$0xff] }
 0x1dc   : > { %vm618_vm15 = vcmp.lt.s32.totalorder %v616_v40, %v617_v58  ;;  %vm1025_vm1 = vcmp.lt.s32.totalorder %v1022_v43, %v997_v53  ;;  %vm1027_vm0 = vcmp.lt.s32.totalorder %v1024_v10, %v999_v16  ;;  %vm526_vm5 = vcmp.eq.f32.partialorder %v1505_v54, %v1739_v47 }
 0x1dd   : > { %v619_v22 = vsel %vm618_vm15, %v616_v40, %v617_v58  ;;  %v1026_v38 = vsel %vm1025_vm1, %v1022_v43, %v997_v53  ;;  %v1028_v26 = vsel %vm1027_vm0, %v1024_v10, %v999_v16  ;;  %vm528_vm9 = vcmp.eq.f32.partialorder %v1517_v60, %v1739_v47  ;;  %v2327_v53 = vld [vmem:[#allocation20_spill] sm:$0xff]  ;;  %v2328_v16 = vld [vmem:[#allocation22_spill] sm:$0xff] }
 0x1de   : > { %v620_v42 = vrot.slane %v619_v22, 2  ;;  %vm1029_vm7 = vcmp.lt.s32.totalorder %v1026_v38, %v1001_v57  ;;  %vm1031_vm8 = vcmp.lt.s32.totalorder %v1028_v26, %v1003_v1  ;;  %vm530_vm11 = vcmp.eq.f32.partialorder %v2320_v45, %v1739_v47  ;;  %v2332_v40 = vld [vmem:[#allocation28_spill] sm:$0xff] }
 0x1df   : > { %v1030_v61 = vsel %vm1029_vm7, %v1026_v38, %v1001_v57  ;;  %v1032_v21 = vsel %vm1031_vm8, %v1028_v26, %v1003_v1  ;;  %vm532_vm12 = vcmp.eq.f32.partialorder %v2321_v7, %v1739_v47  ;;  %vm534_vm13 = vcmp.eq.f32.partialorder %v2322_v55, %v1739_v47 }
 0x1e0   : > { %vm621_vm14 = vcmp.lt.s32.totalorder %v619_v22, %v620_v42  ;;  %vm1033_vm2 = vcmp.lt.s32.totalorder %v1030_v61, %v1005_v17  ;;  %vm1035_vm6 = vcmp.lt.s32.totalorder %v1032_v21, %v1007_v32  ;;  %vm536_vm3 = vcmp.eq.f32.partialorder %v2323_v12, %v1739_v47 }
 0x1e1   : > { %v622_v18 = vsel %vm621_vm14, %v619_v22, %v620_v42  ;;  %v1034_v34 = vsel %vm1033_vm2, %v1030_v61, %v1005_v17  ;;  %v1036_v30 = vsel %vm1035_vm6, %v1032_v21, %v1007_v32  ;;  %vm548_vm7 = vcmp.eq.f32.partialorder %v2329_v9, %v1739_v47  ;;  %v2331_v32 = vld [vmem:[#allocation26_spill] sm:$0xff]  ;;  %v2345_v9 = vld [vmem:[#allocation13_spill] sm:$0xff] }
 0x1e2   : > { %v623_v52 = vrot.slane %v622_v18, 1  ;;  %vm1037_vm1 = vcmp.lt.s32.totalorder %v1034_v34, %v1009_v25  ;;  %vm1039_vm0 = vcmp.lt.s32.totalorder %v1036_v30, %v1011_v33  ;;  %vm550_vm10 = vcmp.eq.f32.partialorder %v2331_v32, %v1739_v47 }
 0x1e3   : > { %v1038_v0 = vsel %vm1037_vm1, %v1034_v34, %v1009_v25  ;;  %v1040_v8 = vsel %vm1039_vm0, %v1036_v30, %v1011_v33  ;;  %vm2330_vm1 = vcmp.lt.f32.partialorder %v1735_v62, inf  ;;  %vm552_vm15 = vcmp.eq.f32.partialorder %v2332_v40, %v1739_v47  ;;  %v2339_v30 = vld [vmem:[#allocation3_spill] sm:$0xff] }
 0x1e4   : > { %vm624_vm14 = vcmp.lt.s32.totalorder %v622_v18, %v623_v52  ;;  %vm1041_vm2 = vcmp.lt.s32.totalorder %v1038_v0, %v1013_v41  ;;  %vm1043_vm6 = vcmp.lt.s32.totalorder %v1040_v8, %v1015_v59  ;;  %v556_v62 = vsel %vm524_vm4, %v1686_v19, 128 }
 0x1e5   : > { %v625_v57 = vsel %vm624_vm14, %v622_v18, %v623_v52  ;;  %v1042_v1 = vsel %vm1041_vm2, %v1038_v0, %v1013_v41  ;;  %v1044_v24 = vsel %vm1043_vm6, %v1040_v8, %v1015_v59  ;;  %v2333_v41 = vld [vmem:[#allocation30_spill] sm:$0xff]  ;;  %v1994_v59 = vmin.f32 %v1712_v31, %v955_v46  ;;  %v2341_v0 = vld [vmem:[#allocation5_spill] sm:$0xff] }
 0x1e6   : > { %v1979_v17 = vsel %vm2330_vm1, %v625_v57, 0  ;;  %vm1045_vm0 = vcmp.lt.s32.totalorder %v1042_v1, %v1017_v11  ;;  %vm1047_vm8 = vcmp.lt.s32.totalorder %v1044_v24, %v1019_v27  ;;  %vm554_vm14 = vcmp.eq.f32.partialorder %v2333_v41, %v1739_v47  ;;  %v2347_v41 = vld [vmem:[#allocation17_spill] sm:$0xff] }
 0x1e7   : > { %v1046_v25 = vsel %vm1045_vm0, %v1042_v1, %v1017_v11  ;;  %v1048_v33 = vsel %vm1047_vm8, %v1044_v24, %v1019_v27  ;;  %v1110_v11 = vunpack.c.0.s8 %v1742_v4  ;;  %v558_v58 = vsel %vm526_vm5, %v1689_v20, 128  ;;  %v2343_v1 = vld [vmem:[#allocation9_spill] sm:$0xff]  ;;  %v2344_v24 = vld [vmem:[#allocation11_spill] sm:$0xff] }
 0x1e8   : > { %vm1049_vm2 = vcmp.lt.s32.totalorder %v1046_v25, %v1048_v33  ;;  %v560_v43 = vsel %vm528_vm9, %v1692_v29, 128  ;;  %v562_v50 = vsel %vm530_vm11, %v1695_v5, 128  ;;  %v564_v31 = vsel %vm532_vm12, %v1698_v37, 128 }
 0x1e9   : > { %v1050_v27 = vsel %vm1049_vm2, %v1046_v25, %v1048_v33  ;;  %v566_v54 = vsel %vm534_vm13, %v1701_v13, 128  ;;  %v568_v60 = vsel %vm536_vm3, %v1704_v2, 128  ;;  %vm2334_vm4 = vcmp.eq.f32.partialorder %v2324_v48, %v1739_v47  ;;  %v2340_v48 = vld [vmem:[#allocation4_spill] sm:$0xff]  ;;  %v2346_v33 = vld [vmem:[#allocation15_spill] sm:$0xff] }
 0x1ea   : > { %v1051_v46 = vrot.slane %v1050_v27, 4  ;;  %v570_v10 = vsel %vm2334_vm4, %v1707_v15, 128  ;;  %vm2335_vm5 = vcmp.eq.f32.partialorder %v2325_v56, %v1739_v47  ;;  %vm2336_vm9 = vcmp.eq.f32.partialorder %v2326_v49, %v1739_v47  ;;  %v2342_v49 = vld [vmem:[#allocation7_spill] sm:$0xff] }
 0x1eb   : > { %v572_v22 = vsel %vm2335_vm5, %v1710_v23, 128  ;;  %v574_v38 = vsel %vm2336_vm9, %v1715_v63, 128  ;;  %vm2337_vm11 = vcmp.eq.f32.partialorder %v2327_v53, %v1739_v47  ;;  %vm2338_vm13 = vcmp.eq.f32.partialorder %v2328_v16, %v1739_v47 }
 0x1ec   : > { %v576_v26 = vsel %vm2337_vm11, %v1718_v39, 128  ;;  %vm1052_vm12 = vcmp.lt.s32.totalorder %v1050_v27, %v1051_v46  ;;  %v578_v42 = vsel %vm2338_vm13, %v1721_v35, 128  ;;  %v580_v45 = vsel %vm548_vm7, %v1724_v44, 128 }
 0x1ed   : > { %v582_v61 = vsel %vm550_vm10, %v1727_v51, 128  ;;  %v1053_v21 = vsel %vm1052_vm12, %v1050_v27, %v1051_v46  ;;  %v584_v7 = vsel %vm552_vm15, %v1730_v28, 128  ;;  %vm626_vm3 = vcmp.lt.s32.totalorder %v556_v62, %v560_v43  ;;  %v2350_v46 = vld [vmem:[#allocation23_spill] sm:$0xff] }
 0x1ee   : > { %vm628_vm8 = vcmp.lt.s32.totalorder %v558_v58, %v562_v50  ;;  %v1054_v55 = vrot.slane %v1053_v21, 2  ;;  %v586_v12 = vsel %vm554_vm14, %v1733_v36, 128  ;;  %v627_v18 = vsel %vm626_vm3, %v556_v62, %v560_v43  ;;  %v2348_v43 = vld [vmem:[#allocation19_spill] sm:$0xff] }
 0x1ef   : > { %v629_v34 = vsel %vm628_vm8, %v558_v58, %v562_v50  ;;  %vm630_vm7 = vcmp.lt.s32.totalorder %v627_v18, %v564_v31  ;;  %vm958_vm10 = vcmp.eq.f32.partialorder %v2339_v30, %v1994_v59  ;;  %vm960_vm1 = vcmp.eq.f32.partialorder %v2340_v48, %v1994_v59  ;;  %v2349_v50 = vld [vmem:[#allocation21_spill] sm:$0xff] }
 0x1f0   : > { %vm632_vm6 = vcmp.lt.s32.totalorder %v629_v34, %v566_v54  ;;  %vm1055_vm0 = vcmp.lt.s32.totalorder %v1053_v21, %v1054_v55  ;;  %v631_v52 = vsel %vm630_vm7, %v627_v18, %v564_v31  ;;  %vm962_vm15 = vcmp.eq.f32.partialorder %v2341_v0, %v1994_v59 }
 0x1f1   : > { %v633_v56 = vsel %vm632_vm6, %v629_v34, %v566_v54  ;;  %v1056_v8 = vsel %vm1055_vm0, %v1053_v21, %v1054_v55  ;;  %vm634_vm2 = vcmp.lt.s32.totalorder %v631_v52, %v568_v60  ;;  %vm964_vm14 = vcmp.eq.f32.partialorder %v2342_v49, %v1994_v59 }
 0x1f2   : > { %vm636_vm4 = vcmp.lt.s32.totalorder %v633_v56, %v570_v10  ;;  %v1057_v53 = vrot.slane %v1056_v8, 1  ;;  %v635_v16 = vsel %vm634_vm2, %v631_v52, %v568_v60  ;;  %vm966_vm5 = vcmp.eq.f32.partialorder %v2343_v1, %v1994_v59 }
 0x1f3   : > { %v637_v57 = vsel %vm636_vm4, %v633_v56, %v570_v10  ;;  %vm638_vm9 = vcmp.lt.s32.totalorder %v635_v16, %v572_v22  ;;  %vm968_vm12 = vcmp.eq.f32.partialorder %v2344_v24, %v1994_v59  ;;  %vm972_vm8 = vcmp.eq.f32.partialorder %v2346_v33, %v1994_v59  ;;  %v2352_v10 = vld [vmem:[#allocation25_spill] sm:$0xff] }
 0x1f4   : > { %vm640_vm11 = vcmp.lt.s32.totalorder %v637_v57, %v574_v38  ;;  %vm1058_vm3 = vcmp.lt.s32.totalorder %v1056_v8, %v1057_v53  ;;  %v639_v32 = vsel %vm638_vm9, %v635_v16, %v572_v22  ;;  %v2353_v22 = vld [vmem:[#allocation27_spill] sm:$0xff]  ;;  %v996_v55 = vsel %vm964_vm14, %v1695_v5, 128 }
 0x1f5   : > { %v641_v25 = vsel %vm640_vm11, %v637_v57, %v574_v38  ;;  %v1059_v40 = vsel %vm1058_vm3, %v1056_v8, %v1057_v53  ;;  %vm642_vm7 = vcmp.lt.s32.totalorder %v639_v32, %v576_v26  ;;  %vm2351_vm3 = vcmp.lt.f32.partialorder %v1737_v14, %v1846_v3  ;;  %v2354_v38 = vld [vmem:[#allocation29_spill] sm:$0xff]  ;;  %v2355_v14 = vld [vmem:[#allocation31_spill] sm:$0xff] }
 0x1f6   : > { %vm644_vm6 = vcmp.lt.s32.totalorder %v641_v25, %v578_v42  ;;  %v1103_v62 = vadd.s32 128, %v1059_v40  ;;  %v643_v27 = vsel %vm642_vm7, %v639_v32, %v576_v26  ;;  %vm982_vm7 = vcmp.eq.f32.partialorder %v2352_v10, %v1994_v59 }
 0x1f7   : > { %v645_v58 = vsel %vm644_vm6, %v641_v25, %v578_v42  ;;  %vm646_vm4 = vcmp.lt.s32.totalorder %v643_v27, %v580_v45  ;;  %vm984_vm0 = vcmp.eq.f32.partialorder %v2353_v22, %v1994_v59  ;;  %vm986_vm9 = vcmp.eq.f32.partialorder %v2354_v38, %v1994_v59 }
 0x1f8   : > { %vm648_vm13 = vcmp.lt.s32.totalorder %v645_v58, %v582_v61  ;;  %v2085_v31 = vsel %vm2351_vm3, %v1103_v62, %v1979_v17  ;;  %v647_v54 = vsel %vm646_vm4, %v643_v27, %v580_v45  ;;  %vm666_vm11 = vcmp.lt.f32.partialorder %v1739_v47, inf }
 0x1f9   : > { %v649_v60 = vsel %vm648_vm13, %v645_v58, %v582_v61  ;;  %vm650_vm6 = vcmp.lt.s32.totalorder %v647_v54, %v584_v7  ;;  %vm988_vm13 = vcmp.eq.f32.partialorder %v2355_v14, %v1994_v59  ;;  %v990_v17 = vsel %vm958_vm10, %v1686_v19, 128 }
 0x1fa   : > { %vm652_vm2 = vcmp.lt.s32.totalorder %v649_v60, %v586_v12  ;;  %v651_v26 = vsel %vm650_vm6, %v647_v54, %v584_v7  ;;  %v994_v45 = vsel %vm962_vm15, %v1692_v29, 128  ;;  %v2109_v21 = vsel %vm666_vm11, %v1739_v47, inf }
 0x1fb   : > { %v653_v42 = vsel %vm652_vm2, %v649_v60, %v586_v12  ;;  %v992_v7 = vsel %vm960_vm1, %v1689_v20, 128  ;;  %v998_v29 = vsel %vm966_vm5, %v1698_v37, 128  ;;  %v2126_v12 = vsub.s32 %v1110_v11, %v1686_v19 }
 0x1fc   : > { %vm654_vm4 = vcmp.lt.s32.totalorder %v651_v26, %v653_v42  ;;  %v2356_v18 = vlaneseq  ;;  %v1000_v20 = vsel %vm968_vm12, %v1701_v13, 128  ;;  %vm2359_vm15 = vcmp.eq.f32.partialorder %v2345_v9, %v1994_v59 }
 0x1fd   : > { %v655_v3 = vsel %vm654_vm4, %v651_v26, %v653_v42  ;;  %v1002_v5 = vsel %vm2359_vm15, %v1704_v2, 128  ;;  %vm1060_vm14 = vcmp.lt.s32.totalorder %v990_v17, %v994_v45  ;;  %vm1062_vm5 = vcmp.lt.s32.totalorder %v992_v7, %v996_v55 }
 0x1fe   : > { %v656_v61 = vrot.slane %v655_v3, 4  ;;  %vm2129_vm10 = vcmp.lt.s32.totalorder %v2356_v18, 256  ;;  %v1061_v19 = vsel %vm1060_vm14, %v990_v17, %v994_v45  ;;  %vm1100_vm2 = vcmp.lt.f32.partialorder %v1994_v59, %v2109_v21 }
 0x1ff   : > { %v1063_v11 = vsel %vm1062_vm5, %v992_v7, %v996_v55  ;;  %vm1064_vm3 = vcmp.lt.s32.totalorder %v1061_v19, %v998_v29  ;;  %v1102_v13 = vsel %vm1100_vm2, %v1994_v59, %v2109_v21  ;;  %v1004_v2 = vsel %vm972_vm8, %v1707_v15, 128 }
 0x200   : > { %vm657_vm1 = vcmp.lt.s32.totalorder %v655_v3, %v656_v61  ;;  %v1065_v30 = vsel %vm1064_vm3, %v1061_v19, %v998_v29  ;;  %vm1066_vm12 = vcmp.lt.s32.totalorder %v1063_v11, %v1000_v20  ;;  %v1129_v48 = vcombine.low %v1949_v6, %v1102_v13 }
 0x201   : > { %v658_v4 = vsel %vm657_vm1, %v655_v3, %v656_v61  ;;  %vm2360_vm4 = vcmp.eq.f32.partialorder %v2347_v41, %v1994_v59  ;;  %v1067_v56 = vsel %vm1066_vm12, %v1063_v11, %v1000_v20  ;;  %vm1068_vm1 = vcmp.lt.s32.totalorder %v1065_v30, %v1002_v5 }
 0x202   : > { %v659_v37 = vrot.slane %v658_v4, 2  ;;  %v1006_v52 = vsel %vm2360_vm4, %v1710_v23, 128  ;;  %v1069_v8 = vsel %vm1068_vm1, %v1065_v30, %v1002_v5  ;;  %vm1070_vm15 = vcmp.lt.s32.totalorder %v1067_v56, %v1004_v2 }
 0x203   : > { %v1136_v49 = vrot.slane %v1129_v48, %v2126_v12  ;;  %vm2361_vm8 = vcmp.eq.f32.partialorder %v2348_v43, %v1994_v59  ;;  %v1071_v6 = vsel %vm1070_vm15, %v1067_v56, %v1004_v2  ;;  %vm1072_vm14 = vcmp.lt.s32.totalorder %v1069_v8, %v1006_v52 }
 0x204   : > { %vm660_vm6 = vcmp.lt.s32.totalorder %v658_v4, %v659_v37  ;;  %v1008_v15 = vsel %vm2361_vm8, %v1715_v63, 128  ;;  %vm2362_vm5 = vcmp.eq.f32.partialorder %v2349_v50, %v1994_v59  ;;  %v1073_v16 = vsel %vm1072_vm14, %v1069_v8, %v1006_v52 }
 0x205   : > { %v661_v0 = vsel %vm660_vm6, %v658_v4, %v659_v37  ;;  %v1010_v23 = vsel %vm2362_vm5, %v1718_v39, 128  ;;  %vm1074_vm3 = vcmp.lt.s32.totalorder %v1071_v6, %v1008_v15  ;;  %v1143_v57 = vrot.slane %v1136_v49, %v2126_v12 }
 0x206   : > { %v662_v53 = vrot.slane %v661_v0, 1  ;;  %vm2363_vm6 = vcmp.eq.f32.partialorder %v2350_v46, %v1994_v59  ;;  %v1075_v24 = vsel %vm1074_vm3, %v1071_v6, %v1008_v15  ;;  %vm1076_vm4 = vcmp.lt.s32.totalorder %v1073_v16, %v1010_v23 }
 0x207   : > { %v1012_v1 = vsel %vm2363_vm6, %v1721_v35, 128  ;;  %v1014_v9 = vsel %vm982_vm7, %v1724_v44, 128  ;;  %v1077_v32 = vsel %vm1076_vm4, %v1073_v16, %v1010_v23  ;;  %1145 = vst.msk [vmem:[%s207_s15] sm:$0x3] %vm2129_vm10, %v1143_v57  ;;  %v1016_v35 = vsel %vm984_vm0, %v1727_v51, 128 }
 0x208   : > { %vm663_vm12 = vcmp.lt.s32.totalorder %v661_v0, %v662_v53  ;;  %vm1078_vm1 = vcmp.lt.s32.totalorder %v1075_v24, %v1012_v1  ;;  %vm1080_vm15 = vcmp.lt.s32.totalorder %v1077_v32, %v1014_v9  ;;  %v1018_v44 = vsel %vm986_vm9, %v1730_v28, 128 }
 0x209   : > { %v664_v63 = vsel %vm663_vm12, %v661_v0, %v662_v53  ;;  %v1079_v25 = vsel %vm1078_vm1, %v1075_v24, %v1012_v1  ;;  %v1081_v33 = vsel %vm1080_vm15, %v1077_v32, %v1014_v9  ;;  %v1020_v47 = vsel %vm988_vm13, %v1733_v36, 128 }
 0x20a   : > { %v670_v39 = vsel %vm666_vm11, %v664_v63, 0  ;;  %vm1082_vm7 = vcmp.lt.s32.totalorder %v1079_v25, %v1016_v35  ;;  %vm1084_vm11 = vcmp.lt.s32.totalorder %v1081_v33, %v1018_v44 }
 0x20b   : > { %v1083_v40 = vsel %vm1082_vm7, %v1079_v25, %v1016_v35  ;;  %v1085_v41 = vsel %vm1084_vm11, %v1081_v33, %v1018_v44 }
 0x20c   : > { %vm1086_vm8 = vcmp.lt.s32.totalorder %v1083_v40, %v1020_v47 }
 0x20d   : > { %v1087_v62 = vsel %vm1086_vm8, %v1083_v40, %v1020_v47 }
 0x20e   : > { %vm1088_vm0 = vcmp.lt.s32.totalorder %v1085_v41, %v1087_v62 }
 0x20f   : > { %v1089_v51 = vsel %vm1088_vm0, %v1085_v41, %v1087_v62 }
 0x210   : > { %v1090_v27 = vrot.slane %v1089_v51, 4 }
 0x212   : > { %vm1091_vm14 = vcmp.lt.s32.totalorder %v1089_v51, %v1090_v27 }
 0x213   : > { %v1092_v58 = vsel %vm1091_vm14, %v1089_v51, %v1090_v27 }
 0x214   : > { %v1093_v43 = vrot.slane %v1092_v58, 2 }
 0x216   : > { %vm1094_vm9 = vcmp.lt.s32.totalorder %v1092_v58, %v1093_v43 }
 0x217   : > { %v1095_v28 = vsel %vm1094_vm9, %v1092_v58, %v1093_v43 }
 0x218   : > { %v1096_v50 = vrot.slane %v1095_v28, 1 }
 0x21a   : > { %vm1097_vm5 = vcmp.lt.s32.totalorder %v1095_v28, %v1096_v50 }
 0x21b   : > { %v1098_v46 = vsel %vm1097_vm5, %v1095_v28, %v1096_v50 }
 0x21c   : > { %v1104_v54 = vadd.s32 128, %v1098_v46 }
 0x21e   : > { %v1106_v36 = vsel %vm1100_vm2, %v1104_v54, %v670_v39 }
 0x21f   : > { %v1107_v60 = vcombine.low %v2085_v31, %v1106_v36 }
 0x221   : > { %v1114_v10 = vrot.slane %v1107_v60, %v2126_v12 }
 0x223   : > { %v1121_v22 = vrot.slane %v1114_v10, %v2126_v12 }
 0x225   : > { %1126 = vst.msk [vmem:[%s202_s20] sm:$0x3] %vm2129_vm10, %v1121_v22 }
 0x226 PF: > { %p11_p9 = scmp.ge.s32.totalorder %s1385_s16, 4   ;;  %s2364_s12 = smov %s1339_s13 }
 0x227   : > { %s2365_s13 = smov %s1394_s19  ;;  %s2366_s14 = smov %s1385_s16 }
 0x228   :  { %13 = sbr.rel (!%p11_p9) target bundleno = 2 (0x2), region = 99 }

</bundles_post_ra>
